<compile_context>
chip_gen: v6e
topology: v6e:2x2x1
jax: 0.10.0
libtpu: 0.0.40
codegen_flags: <defaults>
</compile_context>

<pallas_src>
import functools

import jax
import jax.numpy as jnp
from jax import lax
from jax.experimental import pallas as pl
from jax.experimental.pallas import tpu as pltpu


def _resblock_kernel(x_ref, w1_ref, b1_ref, w2_ref, b2_ref, o_ref, col_ref, *,
                     width, hw):
    # x_ref : (Cp, N), N = B*H*W (lane-dense)    w1_ref: (Cp, 9*Cp)
    # b1_ref: (Cp, 1)   w2_ref: (Cp, Cp)   b2_ref: (Cp, 1)   o_ref: (Cp, N)
    # col_ref: VMEM (9*Cp, N) im2col columns, tap-major, 8-sublane-aligned rows.
    Cp, N = x_ref.shape
    W, HW = width, hw

    x = x_ref[...].astype(jnp.float32)
    h = jnp.maximum(x, 0.0)                         # ReLU #1 (kept in registers)

    # Edge masks from the per-image flat index (power-of-two dims -> bitwise AND).
    idx = lax.broadcasted_iota(jnp.int32, (Cp, N), 1)
    q = (idx & (HW - 1)) if (HW & (HW - 1)) == 0 else idx % HW   # flat idx in image
    cx = (idx & (W - 1)) if (W & (W - 1)) == 0 else idx % W      # column in row
    col_lo = (cx >= 1).astype(jnp.float32)          # valid when tap dx == 0
    col_hi = (cx <= W - 2).astype(jnp.float32)      # valid when tap dx == 2
    row_lo = (q >= W).astype(jnp.float32)           # valid when tap dy == 0
    row_hi = (q < HW - W).astype(jnp.float32)       # valid when tap dy == 2

    # im2col via in-register lane rolls of h: no pad buffer, no misaligned slices.
    # Any wrap of the roll (image->image or end->start) lands only on masked
    # positions, so it never leaks across image / batch boundaries.
    for dy in range(3):
        for dx in range(3):
            s = (dy - 1) * W + (dx - 1)             # flat tap offset
            t = h if s == 0 else pltpu.roll(h, shift=(-s) % N, axis=1)
            m = None
            if dy == 0:
                m = row_lo
            elif dy == 2:
                m = row_hi
            if dx == 0:
                m = col_lo if m is None else m * col_lo
            elif dx == 2:
                m = col_hi if m is None else m * col_hi
            if m is not None:
                t = t * m                           # zero out-of-image taps
            tap = dy * 3 + dx
            col_ref[tap * Cp:(tap + 1) * Cp, :] = t  # 8-sublane-aligned store

    # 3x3 conv == one (Cp, 9Cp) @ (9Cp, N) matmul; bias broadcasts over pixels.
    # TODO(synk): pin matmul precision explicitly (or use bf16 operands on v6e)
    # if exact-f32 vs speed tradeoffs matter at larger C; default passes 1e-5 here.
    h1 = jnp.dot(w1_ref[...], col_ref[...],
                 preferred_element_type=jnp.float32) + b1_ref[...]
    h2 = jnp.maximum(h1, 0.0)                       # ReLU #2

    # 1x1 conv == (Cp, Cp) @ (Cp, N) matmul; fuse bias + residual (pre-ReLU x).
    out = jnp.dot(w2_ref[...], h2,
                  preferred_element_type=jnp.float32) + b2_ref[...]
    o_ref[...] = (x + out).astype(o_ref.dtype)      # lane-dense (Cp, N) store


def resblock_pallas(x_nchw, w1_oihw, b1, w2_oihw, b2):
    """ResBlock forward. x_nchw: (B, C, H, W) float32, weights in PyTorch layout."""
    B, C, H, W = x_nchw.shape
    HW = H * W
    N = B * HW
    Cp = ((C + 7) // 8) * 8                         # pad channels to 8 sublanes

    # --- layout plumbing (tiny tensors, done once outside the kernel) ---
    # x: (B,C,H,W) -> (C, B*HW) -> zero-pad channel rows to Cp.
    xt = jnp.transpose(x_nchw.reshape(B, C, HW), (1, 0, 2)).reshape(C, N)
    xt = jnp.pad(xt.astype(jnp.float32), ((0, Cp - C), (0, 0)))
    # w1: (Cout,Cin,3,3) -> tap-major (Cp,3,3,Cp) -> (Cp, 9*Cp), zero-padded.
    w1t = jnp.transpose(w1_oihw.astype(jnp.float32), (0, 2, 3, 1))   # (C,3,3,C)
    w1f = jnp.zeros((Cp, 3, 3, Cp), jnp.float32).at[:C, :, :, :C].set(w1t)
    w1f = w1f.reshape(Cp, 9 * Cp)
    w2m = jnp.zeros((Cp, Cp), jnp.float32).at[:C, :C].set(
        w2_oihw[:, :, 0, 0].astype(jnp.float32))
    b1c = jnp.zeros((Cp, 1), jnp.float32).at[:C, 0].set(b1.astype(jnp.float32))
    b2c = jnp.zeros((Cp, 1), jnp.float32).at[:C, 0].set(b2.astype(jnp.float32))

    kernel = functools.partial(_resblock_kernel, width=W, hw=HW)

    out = pl.pallas_call(
        kernel,
        out_shape=jax.ShapeDtypeStruct((Cp, N), jnp.float32),
        grid_spec=pltpu.PrefetchScalarGridSpec(
            num_scalar_prefetch=0,
            grid=(1,),                               # whole batch in one step
            in_specs=[
                pl.BlockSpec((Cp, N), lambda i: (0, 0)),          # x (Cp, B*HW)
                pl.BlockSpec((Cp, 9 * Cp), lambda i: (0, 0)),     # w1 stacked
                pl.BlockSpec((Cp, 1), lambda i: (0, 0)),          # b1
                pl.BlockSpec((Cp, Cp), lambda i: (0, 0)),         # w2
                pl.BlockSpec((Cp, 1), lambda i: (0, 0)),          # b2
            ],
            out_specs=pl.BlockSpec((Cp, N), lambda i: (0, 0)),
            scratch_shapes=[
                pltpu.VMEM((9 * Cp, N), jnp.float32),             # im2col columns
            ],
        ),
    )(xt, w1f, b1c, w2m, b2c)

    # (Cp, B*HW) -> (B, C, H, W): drop padded channels, undo the layout plumbing.
    out = out[:C].reshape(C, B, H, W).transpose(1, 0, 2, 3)
    return out.astype(x_nchw.dtype)


def resblock_ref(x_nchw, w1, b1, w2, b2):
    """Pure-JAX reference, NCHW / OIHW, mirroring the PyTorch module (bn=False)."""
    h = jnp.maximum(x_nchw, 0.0)
    h = lax.conv_general_dilated(h, w1, (1, 1), ((1, 1), (1, 1)),
                                 dimension_numbers=('NCHW', 'OIHW', 'NCHW'))
    h = h + b1.reshape(1, -1, 1, 1)
    h = jnp.maximum(h, 0.0)
    h = lax.conv_general_dilated(h, w2, (1, 1), ((0, 0), (0, 0)),
                                 dimension_numbers=('NCHW', 'OIHW', 'NCHW'))
    h = h + b2.reshape(1, -1, 1, 1)
    return x_nchw + h


if __name__ == "__main__":
    # ResBlock(in_channels=4, channels=4, bn=False); residual requires in==out.
    B, C, H, W = 2, 4, 16, 16
    key = jax.random.PRNGKey(0)
    kx, k1, k2, k3, k4 = jax.random.split(key, 5)

    # Deterministic, PyTorch-default-style uniform init (bound = 1/sqrt(fan_in)).
    bound1 = 1.0 / (C * 3 * 3) ** 0.5
    bound2 = 1.0 / (C * 1 * 1) ** 0.5
    x = jax.random.normal(kx, (B, C, H, W), jnp.float32)
    w1 = jax.random.uniform(k1, (C, C, 3, 3), jnp.float32, -bound1, bound1)
    b1 = jax.random.uniform(k2, (C,), jnp.float32, -bound1, bound1)
    w2 = jax.random.uniform(k3, (C, C, 1, 1), jnp.float32, -bound2, bound2)
    b2 = jax.random.uniform(k4, (C,), jnp.float32, -bound2, bound2)

    y = resblock_pallas(x, w1, b1, w2, b2)
    y = jax.block_until_ready(y)

    y_ref = resblock_ref(x, w1, b1, w2, b2)
    assert y.shape == (B, C, H, W)
    assert jnp.allclose(y, y_ref, atol=1e-5, rtol=1e-5), "mismatch vs reference"

    print("KERNEL_OK")
</pallas_src>

<mosaic_0001>
module attributes {stable_mosaic.version = 11 : i64} {
  func.func @_resblock_kernel(%arg0: i32, %arg1: memref<8x512xf32, #tpu.memory_space<vmem>>, %arg2: memref<8x72xf32, #tpu.memory_space<vmem>>, %arg3: memref<8x1xf32, #tpu.memory_space<vmem>>, %arg4: memref<8x8xf32, #tpu.memory_space<vmem>>, %arg5: memref<8x1xf32, #tpu.memory_space<vmem>>, %arg6: memref<8x512xf32, #tpu.memory_space<vmem>>, %arg7: memref<72x512xf32, #tpu.memory_space<vmem>>) attributes {dimension_semantics = [#tpu.dimension_semantics<arbitrary>], iteration_bounds = array<i64: 1>, scalar_prefetch = 0 : i64, scratch_operands = 1 : i64, tpu.core_type = #tpu.core_type<tc>, window_params = [{pipeline_mode = #tpu.pipeline_mode<synchronous>, transform_indices = @transform_0, window_bounds = array<i64: 8, 512>}, {pipeline_mode = #tpu.pipeline_mode<synchronous>, transform_indices = @transform_1, window_bounds = array<i64: 8, 72>}, {pipeline_mode = #tpu.pipeline_mode<synchronous>, transform_indices = @transform_2, window_bounds = array<i64: 8, 1>}, {pipeline_mode = #tpu.pipeline_mode<synchronous>, transform_indices = @transform_3, window_bounds = array<i64: 8, 8>}, {pipeline_mode = #tpu.pipeline_mode<synchronous>, transform_indices = @transform_4, window_bounds = array<i64: 8, 1>}, {pipeline_mode = #tpu.pipeline_mode<synchronous>, transform_indices = @transform_5, window_bounds = array<i64: 8, 512>}]} {
    %c0 = arith.constant 0 : index
    %c0_0 = arith.constant 0 : index
    %0 = vector.load %arg1[%c0, %c0_0] : memref<8x512xf32, #tpu.memory_space<vmem>>, vector<8x512xf32>
    %cst = arith.constant 0.000000e+00 : f32
    %1 = vector.broadcast %cst : f32 to vector<8x512xf32>
    %2 = arith.maximumf %0, %1 : vector<8x512xf32>
    %3 = tpu.iota {dimensions = array<i32: 1>} : vector<8x512xi32>
    %c255_i32 = arith.constant 255 : i32
    %4 = vector.broadcast %c255_i32 : i32 to vector<8x512xi32>
    %5 = arith.andi %3, %4 : vector<8x512xi32>
    %c15_i32 = arith.constant 15 : i32
    %6 = vector.broadcast %c15_i32 : i32 to vector<8x512xi32>
    %7 = arith.andi %3, %6 : vector<8x512xi32>
    %c1_i32 = arith.constant 1 : i32
    %8 = vector.broadcast %c1_i32 : i32 to vector<8x512xi32>
    %9 = arith.cmpi sge, %7, %8 : vector<8x512xi32>
    %10 = arith.extui %9 : vector<8x512xi1> to vector<8x512xi32>
    %11 = arith.sitofp %10 : vector<8x512xi32> to vector<8x512xf32>
    %c14_i32 = arith.constant 14 : i32
    %12 = vector.broadcast %c14_i32 : i32 to vector<8x512xi32>
    %13 = arith.cmpi sle, %7, %12 : vector<8x512xi32>
    %14 = arith.extui %13 : vector<8x512xi1> to vector<8x512xi32>
    %15 = arith.sitofp %14 : vector<8x512xi32> to vector<8x512xf32>
    %c16_i32 = arith.constant 16 : i32
    %16 = vector.broadcast %c16_i32 : i32 to vector<8x512xi32>
    %17 = arith.cmpi sge, %5, %16 : vector<8x512xi32>
    %18 = arith.extui %17 : vector<8x512xi1> to vector<8x512xi32>
    %19 = arith.sitofp %18 : vector<8x512xi32> to vector<8x512xf32>
    %c240_i32 = arith.constant 240 : i32
    %20 = vector.broadcast %c240_i32 : i32 to vector<8x512xi32>
    %21 = arith.cmpi slt, %5, %20 : vector<8x512xi32>
    %22 = arith.extui %21 : vector<8x512xi1> to vector<8x512xi32>
    %23 = arith.sitofp %22 : vector<8x512xi32> to vector<8x512xf32>
    %c17_i32 = arith.constant 17 : i32
    %24 = tpu.dynamic_rotate %2 by %c17_i32 dim 1 : vector<8x512xf32>, i32 -> vector<8x512xf32>
    %25 = arith.mulf %19, %11 : vector<8x512xf32>
    %26 = arith.mulf %24, %25 : vector<8x512xf32>
    %c0_1 = arith.constant 0 : index
    %c0_2 = arith.constant 0 : index
    %27 = vector.load %arg7[%c0_1, %c0_2] : memref<72x512xf32, #tpu.memory_space<vmem>>, vector<8x512xf32>
    tpu.vector_store %arg7[%c0_1, %c0_2], %26 {strides = array<i32>} : memref<72x512xf32, #tpu.memory_space<vmem>>, vector<8x512xf32>,
    %c16_i32_3 = arith.constant 16 : i32
    %28 = tpu.dynamic_rotate %2 by %c16_i32_3 dim 1 : vector<8x512xf32>, i32 -> vector<8x512xf32>
    %29 = arith.mulf %28, %19 : vector<8x512xf32>
    %c8 = arith.constant 8 : index
    %c0_4 = arith.constant 0 : index
    %30 = vector.load %arg7[%c8, %c0_4] : memref<72x512xf32, #tpu.memory_space<vmem>>, vector<8x512xf32>
    tpu.vector_store %arg7[%c8, %c0_4], %29 {strides = array<i32>} : memref<72x512xf32, #tpu.memory_space<vmem>>, vector<8x512xf32>,
    %c15_i32_5 = arith.constant 15 : i32
    %31 = tpu.dynamic_rotate %2 by %c15_i32_5 dim 1 : vector<8x512xf32>, i32 -> vector<8x512xf32>
    %32 = arith.mulf %19, %15 : vector<8x512xf32>
    %33 = arith.mulf %31, %32 : vector<8x512xf32>
    %c16 = arith.constant 16 : index
    %c0_6 = arith.constant 0 : index
    %34 = vector.load %arg7[%c16, %c0_6] : memref<72x512xf32, #tpu.memory_space<vmem>>, vector<8x512xf32>
    tpu.vector_store %arg7[%c16, %c0_6], %33 {strides = array<i32>} : memref<72x512xf32, #tpu.memory_space<vmem>>, vector<8x512xf32>,
    %c1_i32_7 = arith.constant 1 : i32
    %35 = tpu.dynamic_rotate %2 by %c1_i32_7 dim 1 : vector<8x512xf32>, i32 -> vector<8x512xf32>
    %36 = arith.mulf %35, %11 : vector<8x512xf32>
    %c24 = arith.constant 24 : index
    %c0_8 = arith.constant 0 : index
    %37 = vector.load %arg7[%c24, %c0_8] : memref<72x512xf32, #tpu.memory_space<vmem>>, vector<8x512xf32>
    tpu.vector_store %arg7[%c24, %c0_8], %36 {strides = array<i32>} : memref<72x512xf32, #tpu.memory_space<vmem>>, vector<8x512xf32>,
    %c32 = arith.constant 32 : index
    %c0_9 = arith.constant 0 : index
    %38 = vector.load %arg7[%c32, %c0_9] : memref<72x512xf32, #tpu.memory_space<vmem>>, vector<8x512xf32>
    tpu.vector_store %arg7[%c32, %c0_9], %2 {strides = array<i32>} : memref<72x512xf32, #tpu.memory_space<vmem>>, vector<8x512xf32>,
    %c511_i32 = arith.constant 511 : i32
    %39 = tpu.dynamic_rotate %2 by %c511_i32 dim 1 : vector<8x512xf32>, i32 -> vector<8x512xf32>
    %40 = arith.mulf %39, %15 : vector<8x512xf32>
    %c40 = arith.constant 40 : index
    %c0_10 = arith.constant 0 : index
    %41 = vector.load %arg7[%c40, %c0_10] : memref<72x512xf32, #tpu.memory_space<vmem>>, vector<8x512xf32>
    tpu.vector_store %arg7[%c40, %c0_10], %40 {strides = array<i32>} : memref<72x512xf32, #tpu.memory_space<vmem>>, vector<8x512xf32>,
    %c497_i32 = arith.constant 497 : i32
    %42 = tpu.dynamic_rotate %2 by %c497_i32 dim 1 : vector<8x512xf32>, i32 -> vector<8x512xf32>
    %43 = arith.mulf %23, %11 : vector<8x512xf32>
    %44 = arith.mulf %42, %43 : vector<8x512xf32>
    %c48 = arith.constant 48 : index
    %c0_11 = arith.constant 0 : index
    %45 = vector.load %arg7[%c48, %c0_11] : memref<72x512xf32, #tpu.memory_space<vmem>>, vector<8x512xf32>
    tpu.vector_store %arg7[%c48, %c0_11], %44 {strides = array<i32>} : memref<72x512xf32, #tpu.memory_space<vmem>>, vector<8x512xf32>,
    %c496_i32 = arith.constant 496 : i32
    %46 = tpu.dynamic_rotate %2 by %c496_i32 dim 1 : vector<8x512xf32>, i32 -> vector<8x512xf32>
    %47 = arith.mulf %46, %23 : vector<8x512xf32>
    %c56 = arith.constant 56 : index
    %c0_12 = arith.constant 0 : index
    %48 = vector.load %arg7[%c56, %c0_12] : memref<72x512xf32, #tpu.memory_space<vmem>>, vector<8x512xf32>
    tpu.vector_store %arg7[%c56, %c0_12], %47 {strides = array<i32>} : memref<72x512xf32, #tpu.memory_space<vmem>>, vector<8x512xf32>,
    %c495_i32 = arith.constant 495 : i32
    %49 = tpu.dynamic_rotate %2 by %c495_i32 dim 1 : vector<8x512xf32>, i32 -> vector<8x512xf32>
    %50 = arith.mulf %23, %15 : vector<8x512xf32>
    %51 = arith.mulf %49, %50 : vector<8x512xf32>
    %c64 = arith.constant 64 : index
    %c0_13 = arith.constant 0 : index
    %52 = vector.load %arg7[%c64, %c0_13] : memref<72x512xf32, #tpu.memory_space<vmem>>, vector<8x512xf32>
    tpu.vector_store %arg7[%c64, %c0_13], %51 {strides = array<i32>} : memref<72x512xf32, #tpu.memory_space<vmem>>, vector<8x512xf32>,
    %c0_14 = arith.constant 0 : index
    %c0_15 = arith.constant 0 : index
    %53 = vector.load %arg2[%c0_14, %c0_15] : memref<8x72xf32, #tpu.memory_space<vmem>>, vector<8x72xf32>
    %c0_16 = arith.constant 0 : index
    %c0_17 = arith.constant 0 : index
    %54 = vector.load %arg7[%c0_16, %c0_17] : memref<72x512xf32, #tpu.memory_space<vmem>>, vector<72x512xf32>
    %cst_18 = arith.constant dense<0.000000e+00> : vector<8x512xf32>
    %55 = tpu.matmul %53, %54, %cst_18 {dimension_numbers = #tpu.dot_dimension_numbers<[1], [0], [0], [1], [0, 0, 1, 1], [], []>} : vector<8x72xf32>, vector<72x512xf32>, vector<8x512xf32> -> vector<8x512xf32>
    %c0_19 = arith.constant 0 : index
    %c0_20 = arith.constant 0 : index
    %56 = vector.load %arg3[%c0_19, %c0_20] : memref<8x1xf32, #tpu.memory_space<vmem>>, vector<8x1xf32>
    %57 = vector.broadcast %56 : vector<8x1xf32> to vector<8x512xf32>
    %58 = arith.addf %55, %57 : vector<8x512xf32>
    %cst_21 = arith.constant 0.000000e+00 : f32
    %59 = vector.broadcast %cst_21 : f32 to vector<8x512xf32>
    %60 = arith.maximumf %58, %59 : vector<8x512xf32>
    %c0_22 = arith.constant 0 : index
    %c0_23 = arith.constant 0 : index
    %61 = vector.load %arg4[%c0_22, %c0_23] : memref<8x8xf32, #tpu.memory_space<vmem>>, vector<8x8xf32>
    %cst_24 = arith.constant dense<0.000000e+00> : vector<8x512xf32>
    %62 = tpu.matmul %61, %60, %cst_24 {dimension_numbers = #tpu.dot_dimension_numbers<[1], [0], [0], [1], [0, 0, 1, 1], [], []>} : vector<8x8xf32>, vector<8x512xf32>, vector<8x512xf32> -> vector<8x512xf32>
    %c0_25 = arith.constant 0 : index
    %c0_26 = arith.constant 0 : index
    %63 = vector.load %arg5[%c0_25, %c0_26] : memref<8x1xf32, #tpu.memory_space<vmem>>, vector<8x1xf32>
    %64 = vector.broadcast %63 : vector<8x1xf32> to vector<8x512xf32>
    %65 = arith.addf %62, %64 : vector<8x512xf32>
    %66 = arith.addf %0, %65 : vector<8x512xf32>
    %c0_27 = arith.constant 0 : index
    %c0_28 = arith.constant 0 : index
    %67 = vector.load %arg6[%c0_27, %c0_28] : memref<8x512xf32, #tpu.memory_space<vmem>>, vector<8x512xf32>
    tpu.vector_store %arg6[%c0_27, %c0_28], %66 {strides = array<i32>} : memref<8x512xf32, #tpu.memory_space<vmem>>, vector<8x512xf32>,
    return
  }
  func.func @transform_0(%arg0: i32) -> (i32, i32) {
    %c0_i32 = arith.constant 0 : i32
    %c0_i32_0 = arith.constant 0 : i32
    %c0_i32_1 = arith.constant 0 : i32
    return %c0_i32, %c0_i32_0 : i32, i32
  }
  func.func @transform_1(%arg0: i32) -> (i32, i32) {
    %c0_i32 = arith.constant 0 : i32
    %c0_i32_0 = arith.constant 0 : i32
    %c0_i32_1 = arith.constant 0 : i32
    return %c0_i32, %c0_i32_0 : i32, i32
  }
  func.func @transform_2(%arg0: i32) -> (i32, i32) {
    %c0_i32 = arith.constant 0 : i32
    %c0_i32_0 = arith.constant 0 : i32
    %c0_i32_1 = arith.constant 0 : i32
    return %c0_i32, %c0_i32_0 : i32, i32
  }
  func.func @transform_3(%arg0: i32) -> (i32, i32) {
    %c0_i32 = arith.constant 0 : i32
    %c0_i32_0 = arith.constant 0 : i32
    %c0_i32_1 = arith.constant 0 : i32
    return %c0_i32, %c0_i32_0 : i32, i32
  }
  func.func @transform_4(%arg0: i32) -> (i32, i32) {
    %c0_i32 = arith.constant 0 : i32
    %c0_i32_0 = arith.constant 0 : i32
    %c0_i32_1 = arith.constant 0 : i32
    return %c0_i32, %c0_i32_0 : i32, i32
  }
  func.func @transform_5(%arg0: i32) -> (i32, i32) {
    %c0_i32 = arith.constant 0 : i32
    %c0_i32_0 = arith.constant 0 : i32
    %c0_i32_1 = arith.constant 0 : i32
    return %c0_i32, %c0_i32_0 : i32, i32
  }
}

</mosaic_0001>

<bundles_post_ra>
// kernel: tpu_custom_call.1
= control target key start
LH: loop header
LB: loop body
LE: loop exit
PB: predicated region body
PF: predicated region fallthrough
CT: control target
= control target key end

     0   :  { %10 = vsyncpa [#allocation4], 0  ;;  %s952_s0 = inlined_call_operand.hbm [shape: f32[8,512], index: 0, kind: input, shape index: {}]   ;;  %s953_s1 = inlined_call_operand.vmem [shape: f32[8,72], index: 1, kind: input, shape index: {}]   ;;  %s954_s2 = inlined_call_operand.vmem [shape: f32[8,1], index: 2, kind: input, shape index: {}]   ;;  %s955_s3 = inlined_call_operand.vmem [shape: f32[8,8], index: 3, kind: input, shape index: {}]   ;;  %s956_s4 = inlined_call_operand.vmem [shape: f32[8,1], index: 4, kind: input, shape index: {}]   ;;  %s957_s5 = inlined_call_operand.hbm [shape: f32[8,512], index: 5, kind: output, shape index: {}]  }
   0x1   :  { %11 = vsyncpa [#allocation5], 0  ;;  %s733_s18 = smov [#allocation3]  }
   0x2   :  { %s18_s19 = sshll.u32 %s733_s18, 4  ;;  %s19_s19 = int_to_ptr.vmem [resolvable:$true] %s18_s19 }
   0x3   :  { %s697_s20 = scalar_lea.vmem %s19_s19, 512  ;;  %p702_p1 = scmp.lt.s32.totalorder %s19_s19, %s19_s19 }
   0x4   :  { %p698_p0 = scmp.ne.s32.totalorder %s19_s19, %s697_s20  ;;  %p703_p2 = scmp.lt.s32.totalorder %s697_s20, %s697_s20 }
   0x6   :  { %p704_p3 = por %p703_p2, %p702_p1 }
   0x8   :  { %p705_p4 = pnand %p704_p3, %p698_p0 }
   0xa   :  { %708 = shalt.err (!%p705_p4)
}
   0xb   :  { %21 = dma.hbm_to_vmem [thread:$0]  %s952_s0, 512, %s19_s19, [#allocation4]  }
   0xc   :  { %729 = dma.done.wait [#allocation4], 512  }
   0xd   :  { %730 = vsyncadd [#allocation4], 4294966784  ;;  %v734_v0 = vmov 0.0   ;;  %v780_v1 = vld [vmem:[#allocation3 + $0x10] sm:$0xff]  ;;  %v782_v2 = vld [vmem:[#allocation3] sm:$0xff]  ;;  %s735_s0 = smov 111   ;;  %v41_v11 = vlaneseq }
   0xe   :  { %401 = vmatprep.mubr.f32.mxu0 %v734_v0  ;;  %472 = vmatprep.mubr.f32.mxu1 %v734_v0  ;;  %v784_v3 = vld [vmem:[#allocation3 + $0x18] sm:$0xff]  ;;  %v787_v4 = vmax.f32 %v780_v1, 0.0  ;;  %v790_v5 = vmax.f32 %v782_v2, 0.0  ;;  %v792_v6 = vld [vmem:[#allocation3 + $0x8] sm:$0xff]  ;;  %s736_s23 = smov 112   ;;  %s737_s24 = smov 113  }
   0xf   :  { %v797_v7 = vmax.f32 %v784_v3, 0.0  ;;  %v800_v8 = vmax.f32 %v792_v6, 0.0  ;;  %s738_s25 = smov 127   ;;  %s739_s26 = smov 1   ;;  %v742_v9 = vmov 0   ;;  %v327_v10 = vld [vmem:[%s954_s2] sm:$0xff] }
  0x10   :  { %269 = vrot.lane.b32.xlu1 %v787_v4, %s735_s0  ;;  %265 = vrot.lane.b32.xlu0 %v790_v5, %s735_s0  ;;  %s740_s27 = smov 15   ;;  %s741_s28 = smov 16   ;;  %v835_v12 = vand.u32 127, %v41_v11 }
  0x11   :  { %687 = vset.pattern.permute.xlu0 %v742_v9  ;;  %688 = vset.pattern.permute.xlu1 %v742_v9  ;;  %s743_s29 = smov 17  }
  0x12   :  { %v43_v13 = vadd.s32 128, %v835_v12  ;;  %v45_v14 = vadd.s32 384, %v835_v12  ;;  %v840_v15 = vadd.s32 256, %v835_v12  ;;  %v50_v20 = vand.u32 15, %v835_v12 }
  0x13   :  { %vm273_vm6 = vcmp.lt.s32.totalorder %v835_v12, 111  ;;  %vm252_vm7 = vcmp.lt.s32.totalorder %v835_v12, 112  ;;  %vm227_vm12 = vcmp.lt.s32.totalorder %v835_v12, 113  ;;  %vm206_vm13 = vcmp.lt.s32.totalorder %v835_v12, 127 }
  0x14   :  { %271 = vrot.lane.b32.xlu1 %v797_v7, %s735_s0  ;;  %267 = vrot.lane.b32.xlu0 %v800_v8, %s735_s0  ;;  %v47_v16 = vand.u32 255, %v43_v13  ;;  %v51_v17 = vand.u32 15, %v43_v13  ;;  %v49_v18 = vand.u32 255, %v45_v14  ;;  %v53_v19 = vand.u32 15, %v45_v14 }
  0x15   :  { %v52_v21 = vand.u32 15, %v840_v15  ;;  %vm66_vm4 = vcmp.le.s32.totalorder %v50_v20, 14  ;;  %vm54_vm11 = vcmp.ge.s32.totalorder %v50_v20, 1  ;;  %vm181_vm14 = vcmp.lt.s32.totalorder %v835_v12, 1 }
  0x16   :  { %vm67_vm0 = vcmp.le.s32.totalorder %v51_v17, 14  ;;  %vm91_vm1 = vcmp.lt.s32.totalorder %v47_v16, 240  ;;  %vm69_vm2 = vcmp.le.s32.totalorder %v53_v19, 14  ;;  %vm93_vm3 = vcmp.lt.s32.totalorder %v49_v18, 240 }
  0x17   :  { %v845_v22 = vsel %vm67_vm0, 1.0, %v734_v0  ;;  %v669_v23 = vsel %vm91_vm1, 1.0, %v734_v0  ;;  %v849_v24 = vsel %vm69_vm2, 1.0, %v734_v0  ;;  %v670_v25 = vsel %vm93_vm3, 1.0, %v734_v0 }
  0x18   :  { %246 = vrot.lane.b32.xlu1 %v800_v8, %s736_s23  ;;  %244 = vrot.lane.b32.xlu0 %v790_v5, %s736_s23  ;;  %vm68_vm5 = vcmp.le.s32.totalorder %v52_v21, 14  ;;  %v279_v28 = vmul.f32 %v669_v23, %v845_v22  ;;  %v281_v29 = vmul.f32 %v670_v25, %v849_v24  ;;  %v856_v30 = vsel %vm66_vm4, 1.0, %v734_v0 }
  0x19   :  { %v859_v31 = vsel %vm68_vm5, 1.0, %v734_v0  ;;  %vm57_vm8 = vcmp.ge.s32.totalorder %v53_v19, 1  ;;  %vm55_vm9 = vcmp.ge.s32.totalorder %v51_v17, 1  ;;  %vm56_vm10 = vcmp.ge.s32.totalorder %v52_v21, 1 }
  0x1a   :  { %v869_v50 = vsel %vm57_vm8, 1.0, %v734_v0  ;;  %v872_v51 = vsel %vm55_vm9, 1.0, %v734_v0  ;;  %v882_v58 = vsel %vm56_vm10, 1.0, %v734_v0  ;;  %v885_v59 = vsel %vm54_vm11, 1.0, %v734_v0 }
  0x1b   :  { %v235_v56 = vmul.f32 %v670_v25, %v869_v50  ;;  %v233_v57 = vmul.f32 %v669_v23, %v872_v51  ;;  %vm156_vm1 = vcmp.lt.s32.totalorder %v835_v12, 15  ;;  %vm135_vm2 = vcmp.lt.s32.totalorder %v835_v12, 16 }
  0x1c   :  { %250 = vrot.lane.b32.xlu1 %v797_v7, %s736_s23  ;;  %248 = vrot.lane.b32.xlu0 %v787_v4, %s736_s23  ;;  %vm110_vm3 = vcmp.lt.s32.totalorder %v835_v12, 17  ;;  %vm333_vm4 = vcmask 588800   ;;  %vm490_vm5 = vcmask 64512  }
  0x20   :  { %221 = vrot.lane.b32.xlu1 %v800_v8, %s737_s24  ;;  %219 = vrot.lane.b32.xlu0 %v790_v5, %s737_s24 }
  0x24   :  { %225 = vrot.lane.b32.xlu1 %v797_v7, %s737_s24  ;;  %223 = vrot.lane.b32.xlu0 %v787_v4, %s737_s24 }
  0x28   :  { %200 = vrot.lane.b32.xlu1 %v800_v8, %s738_s25  ;;  %198 = vrot.lane.b32.xlu0 %v790_v5, %s738_s25 }
  0x2c   :  { %204 = vrot.lane.b32.xlu1 %v797_v7, %s738_s25  ;;  %202 = vrot.lane.b32.xlu0 %v787_v4, %s738_s25 }
  0x30   :  { %175 = vrot.lane.b32.xlu1 %v800_v8, %s739_s26  ;;  %173 = vrot.lane.b32.xlu0 %v790_v5, %s739_s26 }
  0x34   :  { %179 = vrot.lane.b32.xlu1 %v797_v7, %s739_s26  ;;  %177 = vrot.lane.b32.xlu0 %v787_v4, %s739_s26 }
  0x38   :  { %150 = vrot.lane.b32.xlu1 %v800_v8, %s740_s27  ;;  %148 = vrot.lane.b32.xlu0 %v790_v5, %s740_s27 }
  0x3c   :  { %154 = vrot.lane.b32.xlu1 %v797_v7, %s740_s27  ;;  %152 = vrot.lane.b32.xlu0 %v787_v4, %s740_s27 }
  0x40   :  { %129 = vrot.lane.b32.xlu1 %v800_v8, %s741_s28  ;;  %127 = vrot.lane.b32.xlu0 %v790_v5, %s741_s28 }
  0x44   :  { %133 = vrot.lane.b32.xlu1 %v797_v7, %s741_s28  ;;  %131 = vrot.lane.b32.xlu0 %v787_v4, %s741_s28 }
  0x48   :  { %104 = vrot.lane.b32.xlu1 %v800_v8, %s743_s29  ;;  %102 = vrot.lane.b32.xlu0 %v790_v5, %s743_s29 }
  0x4c   :  { %108 = vrot.lane.b32.xlu1 %v797_v7, %s743_s29  ;;  %106 = vrot.lane.b32.xlu0 %v787_v4, %s743_s29 }
  0x50   :  { %330 = vperm.xlu0 %687, %v327_v10  }
  0x82   :  { %v270_v26 = vpop.permute.xlu1 %269  ;;  %v266_v27 = vpop.permute.xlu0 %265 }
  0x86   :  { %v272_v32 = vpop.permute.xlu1 %271  ;;  %v268_v33 = vpop.permute.xlu0 %267 }
  0x87   :  { %v274_v34 = vsel %vm273_vm6, %v270_v26, %v272_v32  ;;  %v276_v35 = vsel %vm273_vm6, %v266_v27, %v268_v33  ;;  %v275_v36 = vsel %vm273_vm6, %v268_v33, %v270_v26  ;;  %v277_v37 = vsel %vm273_vm6, %v272_v32, %v266_v27 }
  0x88   :  { %v283_v38 = vmul.f32 %v279_v28, %v275_v36  ;;  %v285_v39 = vmul.f32 %v281_v29, %v277_v37  ;;  %v282_v40 = vmul.f32 %v856_v30, %v276_v35  ;;  %v284_v41 = vmul.f32 %v859_v31, %v274_v34 }
  0x89   :  { %v46_v35 = vand.u32 255, %v835_v12  ;;  %v48_v36 = vand.u32 255, %v840_v15 }
  0x8a   :  { %v247_v42 = vpop.permute.xlu1 %246  ;;  %351 = vmatprep.subr.mxu0 %v283_v38  ;;  %422 = vmatprep.subr.mxu1 %v285_v39  ;;  %v245_v43 = vpop.permute.xlu0 %244 }
  0x8b   :  { %352 = vmatpush1.msra.mxu0 %v282_v40  ;;  %423 = vmatpush1.msra.mxu1 %v284_v41  ;;  %v255_v54 = vsel %vm252_vm7, %v245_v43, %v247_v42  ;;  %vm78_vm15 = vcmp.ge.s32.totalorder %v46_v35, 16  ;;  %vm80_vm0 = vcmp.ge.s32.totalorder %v48_v36, 16 }
  0x8e   :  { %v251_v44 = vpop.permute.xlu1 %250  ;;  %v249_v45 = vpop.permute.xlu0 %248 }
  0x8f   :  { %v256_v46 = vsel %vm252_vm7, %v251_v44, %v245_v43  ;;  %v254_v47 = vsel %vm252_vm7, %v247_v42, %v249_v45  ;;  %v253_v55 = vsel %vm252_vm7, %v249_v45, %v251_v44  ;;  %v667_v42 = vsel %vm78_vm15, 1.0, %v734_v0 }
  0x90   :  { %v260_v48 = vmul.f32 %v670_v25, %v256_v46  ;;  %v258_v49 = vmul.f32 %v669_v23, %v254_v47  ;;  %v668_v43 = vsel %vm80_vm0, 1.0, %v734_v0 }
  0x92   :  { %v222_v52 = vpop.permute.xlu1 %221  ;;  %353 = vmatprep.subr.mxu0 %v258_v49  ;;  %424 = vmatprep.subr.mxu1 %v260_v48  ;;  %v220_v53 = vpop.permute.xlu0 %219  ;;  %v161_v48 = vmul.f32 %v667_v42, %v856_v30  ;;  %v163_v49 = vmul.f32 %v668_v43, %v859_v31 }
  0x93   :  { %354 = vmatpush1.msra.mxu0 %v255_v54  ;;  %425 = vmatpush1.msra.mxu1 %v253_v55  ;;  %v230_v60 = vsel %vm227_vm12, %v220_v53, %v222_v52 }
  0x94   :  { %v236_v16 = vmul.f32 %v885_v59, %v230_v60 }
  0x96   :  { %v226_v61 = vpop.permute.xlu1 %225  ;;  %v224_v62 = vpop.permute.xlu0 %223 }
  0x97   :  { %v231_v63 = vsel %vm227_vm12, %v226_v61, %v220_v53  ;;  %v228_v9 = vsel %vm227_vm12, %v224_v62, %v226_v61  ;;  %v229_v10 = vsel %vm227_vm12, %v222_v52, %v224_v62 }
  0x98   :  { %v239_v11 = vmul.f32 %v235_v56, %v231_v63  ;;  %v237_v13 = vmul.f32 %v233_v57, %v229_v10  ;;  %v238_v14 = vmul.f32 %v882_v58, %v228_v9 }
  0x9a   :  { %v201_v17 = vpop.permute.xlu1 %200  ;;  %355 = vmatprep.subr.mxu0 %v237_v13  ;;  %426 = vmatprep.subr.mxu1 %v239_v11  ;;  %v199_v18 = vpop.permute.xlu0 %198 }
  0x9b   :  { %356 = vmatpush1.msra.mxu0 %v236_v16  ;;  %427 = vmatpush1.msra.mxu1 %v238_v14  ;;  %v209_v19 = vsel %vm206_vm13, %v199_v18, %v201_v17 }
  0x9c   :  { %v211_v32 = vmul.f32 %v856_v30, %v209_v19  ;;  %v115_v19 = vmul.f32 %v667_v42, %v885_v59 }
  0x9e   :  { %v205_v20 = vpop.permute.xlu1 %204  ;;  %v203_v21 = vpop.permute.xlu0 %202 }
  0x9f   :  { %v210_v23 = vsel %vm206_vm13, %v205_v20, %v199_v18  ;;  %v207_v25 = vsel %vm206_vm13, %v203_v21, %v205_v20  ;;  %v208_v26 = vsel %vm206_vm13, %v201_v17, %v203_v21  ;;  %v117_v20 = vmul.f32 %v668_v43, %v882_v58 }
  0xa0   :  { %v214_v27 = vmul.f32 %v849_v24, %v210_v23  ;;  %v212_v28 = vmul.f32 %v845_v22, %v208_v26  ;;  %v213_v29 = vmul.f32 %v859_v31, %v207_v25 }
  0xa2   :  { %v176_v33 = vpop.permute.xlu1 %175  ;;  %357 = vmatprep.subr.mxu0 %v212_v28  ;;  %428 = vmatprep.subr.mxu1 %v214_v27  ;;  %v174_v34 = vpop.permute.xlu0 %173 }
  0xa3   :  { %v184_v37 = vsel %vm181_vm14, %v174_v34, %v176_v33  ;;  %358 = vmatpush1.msra.mxu0 %v211_v32  ;;  %429 = vmatpush1.msra.mxu1 %v213_v29  ;;  %v290_v32 = vld [vmem:[%s953_s1] sm:$0xff] }
  0xa4   :  { %v187_v38 = vmul.f32 %v872_v51, %v184_v37  ;;  %359 = vmatprep.subr.mxu0 %v800_v8  ;;  %430 = vmatprep.subr.mxu1 %v797_v7 }
  0xa5   :  { %360 = vmatpush1.msra.mxu0 %v790_v5  ;;  %431 = vmatpush1.msra.mxu1 %v787_v4 }
  0xa6   :  { %v180_v39 = vpop.permute.xlu1 %179  ;;  %361 = vmatprep.subr.mxu0 %v187_v38  ;;  %v178_v40 = vpop.permute.xlu0 %177 }
  0xa7   :  { %v185_v15 = vsel %vm181_vm14, %v180_v39, %v174_v34  ;;  %v182_v41 = vsel %vm181_vm14, %v178_v40, %v180_v39  ;;  %v183_v8 = vsel %vm181_vm14, %v176_v33, %v178_v40 }
  0xa8   :  { %v186_v7 = vmul.f32 %v885_v59, %v185_v15  ;;  %v188_v5 = vmul.f32 %v882_v58, %v183_v8  ;;  %v189_v4 = vmul.f32 %v869_v50, %v182_v41 }
  0xaa   :  { %v151_v44 = vpop.permute.xlu1 %150  ;;  %362 = vmatpush1.msra.mxu0 %v186_v7  ;;  %432 = vmatprep.subr.mxu1 %v189_v4  ;;  %v149_v45 = vpop.permute.xlu0 %148 }
  0xab   :  { %v159_v46 = vsel %vm156_vm1, %v149_v45, %v151_v44  ;;  %433 = vmatpush1.msra.mxu1 %v188_v5 }
  0xac   :  { %v166_v47 = vmul.f32 %v845_v22, %v159_v46 }
  0xae   :  { %v155_v52 = vpop.permute.xlu1 %154  ;;  %363 = vmatprep.subr.mxu0 %v166_v47  ;;  %v153_v53 = vpop.permute.xlu0 %152 }
  0xaf   :  { %v160_v54 = vsel %vm156_vm1, %v155_v52, %v149_v45  ;;  %v157_v55 = vsel %vm156_vm1, %v153_v53, %v155_v52  ;;  %v158_v56 = vsel %vm156_vm1, %v151_v44, %v153_v53 }
  0xb0   :  { %v165_v57 = vmul.f32 %v161_v48, %v160_v54  ;;  %v167_v60 = vmul.f32 %v163_v49, %v158_v56  ;;  %v168_v22 = vmul.f32 %v849_v24, %v157_v55 }
  0xb2   :  { %v130_v30 = vpop.permute.xlu1 %129  ;;  %364 = vmatpush1.msra.mxu0 %v165_v57  ;;  %434 = vmatprep.subr.mxu1 %v168_v22  ;;  %v128_v31 = vpop.permute.xlu0 %127 }
  0xb3   :  { %435 = vmatpush1.msra.mxu1 %v167_v60  ;;  %v138_v61 = vsel %vm135_vm2, %v128_v31, %v130_v30 }
  0xb4   :  { %365 = vmatprep.subr.mxu0 %v138_v61 }
  0xb6   :  { %v134_v62 = vpop.permute.xlu1 %133  ;;  %v132_v63 = vpop.permute.xlu0 %131 }
  0xb7   :  { %v139_v9 = vsel %vm135_vm2, %v134_v62, %v128_v31  ;;  %v137_v10 = vsel %vm135_vm2, %v130_v30, %v132_v63  ;;  %v136_v11 = vsel %vm135_vm2, %v132_v63, %v134_v62 }
  0xb8   :  { %v140_v13 = vmul.f32 %v667_v42, %v139_v9  ;;  %v142_v14 = vmul.f32 %v668_v43, %v137_v10  ;;  %436 = vmatprep.subr.mxu1 %v136_v11 }
  0xba   :  { %v105_v24 = vpop.permute.xlu1 %104  ;;  %366 = vmatpush1.msra.mxu0 %v140_v13  ;;  %437 = vmatpush1.msra.mxu1 %v142_v14  ;;  %v103_v16 = vpop.permute.xlu0 %102 }
  0xbb   :  { %v113_v17 = vsel %vm110_vm3, %v103_v16, %v105_v24 }
  0xbc   :  { %v120_v18 = vmul.f32 %v872_v51, %v113_v17  ;;  %v484_v51 = vld [vmem:[%s956_s4] sm:$0xff]  ;;  %s744_s4 = smov [#allocation6]  }
  0xbd   :  { %487 = vperm.xlu1 %688, %v484_v51  }
  0xbe   :  { %v109_v21 = vpop.permute.xlu1 %108  ;;  %367 = vmatprep.subr.mxu0 %v120_v18  ;;  %v107_v23 = vpop.permute.xlu0 %106 }
  0xbf   :  { %v114_v25 = vsel %vm110_vm3, %v109_v21, %v103_v16  ;;  %v111_v26 = vsel %vm110_vm3, %v107_v23, %v109_v21  ;;  %v112_v27 = vsel %vm110_vm3, %v105_v24, %v107_v23 }
  0xc0   :  { %v119_v28 = vmul.f32 %v115_v19, %v114_v25  ;;  %v121_v29 = vmul.f32 %v117_v20, %v112_v27  ;;  %v122_v12 = vmul.f32 %v869_v50, %v111_v26 }
  0xc2   :  { %368 = vmatpush1.msra.mxu0 %v119_v28  ;;  %438 = vmatprep.subr.mxu1 %v122_v12 }
  0xc3   :  { %671 = vmatmul.mubr.msk.f32.vlgmr.msra.gmra.mxu0 %vm333_vm4, %v290_v32  ;;  %439 = vmatpush1.msra.mxu1 %v121_v29 }
  0xc4   :  { %672 = vmatmul.mubr.msk.f32.vlgmr.msra.gmra.mxu1 %vm333_vm4, %v290_v32  ;;  %558 = vmatprep.mubr.f32.mxu0 %v734_v0 }
  0xc5   :  { %629 = vmatprep.mubr.f32.mxu1 %v734_v0  ;;  %v483_v0 = vld [vmem:[%s955_s3] sm:$0xff]  ;;  %s650_s3 = sshll.u32 %s744_s4, 4  ;;  %s651_s3 = int_to_ptr.vmem [resolvable:$true] %s650_s3 }
  0xc6   :  { %s709_s11 = scalar_lea.vmem %s651_s3, 512  ;;  %p714_p6 = scmp.lt.s32.totalorder %s651_s3, %s651_s3 }
  0xc7   :  { %p710_p5 = scmp.ne.s32.totalorder %s651_s3, %s709_s11  ;;  %p715_p7 = scmp.lt.s32.totalorder %s709_s11, %s709_s11 }
  0xc9   :  { %p716_p8 = por %p715_p7, %p714_p6 }
  0xcb   :  { %v331_v50 = vpop.permute.xlu0 %330  ;;  %p717_p9 = pnand %p716_p8, %p710_p5 }
 0x138   :  { %v488_v8 = vpop.permute.xlu1 %487 }
 0x183   :  { %v403_v58 = vpop.f32.mrf.mxu0 }
 0x184   :  { %v474_v59 = vpop.f32.mrf.mxu1  ;;  %v404_v33 = vadd.f32 %v403_v58, %v331_v50 }
 0x185   :  { %v405_v34 = vpop.f32.mrf.mxu0  ;;  %v475_v35 = vadd.f32 %v474_v59, %v331_v50 }
 0x186   :  { %v406_v36 = vadd.f32 %v405_v34, %v331_v50  ;;  %v476_v37 = vpop.f32.mrf.mxu1  ;;  %v479_v40 = vmax.f32 %v404_v33, 0.0 }
 0x187   :  { %v477_v38 = vadd.f32 %v476_v37, %v331_v50  ;;  %v481_v41 = vmax.f32 %v475_v35, 0.0 }
 0x188   :  { %v480_v39 = vmax.f32 %v406_v36, 0.0 }
 0x189   :  { %v482_v15 = vmax.f32 %v477_v38, 0.0 }
 0x18a   :  { %524 = vmatprep.subr.mxu0 %v480_v39 }
 0x18b   :  { %525 = vmatpush1.msra.mxu0 %v479_v40  ;;  %595 = vmatprep.subr.mxu1 %v482_v15 }
 0x18c   :  { %596 = vmatpush1.msra.mxu1 %v481_v41  ;;  %673 = vmatmul.mubr.msk.f32.vlgmr.msra.gmra.mxu0 %vm490_vm5, %v483_v0 }
 0x18d   :  { %674 = vmatmul.mubr.msk.f32.vlgmr.msra.gmra.mxu1 %vm490_vm5, %v483_v0 }
 0x24c   :  { %v560_v7 = vpop.f32.mrf.mxu0 }
 0x24d   :  { %v631_v5 = vpop.f32.mrf.mxu1  ;;  %v561_v4 = vadd.f32 %v560_v7, %v488_v8 }
 0x24e   :  { %v632_v42 = vadd.f32 %v631_v5, %v488_v8  ;;  %v562_v43 = vpop.f32.mrf.mxu0 }
 0x24f   :  { %v636_v44 = vadd.f32 %v561_v4, %v782_v2  ;;  %v563_v45 = vadd.f32 %v562_v43, %v488_v8  ;;  %v633_v46 = vpop.f32.mrf.mxu1 }
 0x250   :  { %v638_v47 = vadd.f32 %v632_v42, %v780_v1  ;;  %v634_v48 = vadd.f32 %v633_v46, %v488_v8 }
 0x251   :  { %640 = vst [vmem:[#allocation6] sm:$0xff] %v636_v44  ;;  %v637_v49 = vadd.f32 %v563_v45, %v792_v6 }
 0x252   :  { %642 = vst [vmem:[#allocation6 + $0x10] sm:$0xff] %v638_v47  ;;  %v639_v52 = vadd.f32 %v634_v48, %v784_v3 }
 0x253   :  { %641 = vst [vmem:[#allocation6 + $0x8] sm:$0xff] %v637_v49 }
 0x254   :  { %643 = vst [vmem:[#allocation6 + $0x18] sm:$0xff] %v639_v52 }
 0x255   :  { %720 = shalt.err (!%p717_p9)
}
 0x256   :  { %653 = dma.vmem_to_hbm [thread:$0]  %s651_s3, 512, %s957_s5, [#allocation5]  }
 0x257   :  { %731 = dma.done.wait [#allocation5], 512  }
 0x258   :  { %732 = vsyncadd [#allocation5], 4294966784 }
 0x259   :  { %657 = vsyncpa [#allocation4], 1 }
 0x25a   :  { %658 = vsyncpa [#allocation5], 1 }

</bundles_post_ra>
